<compile_context>
chip_gen: v7x
topology: tpu7x:2x2x1
jax: 0.10.0
libtpu: 0.0.40
codegen_flags: <defaults>
</compile_context>

<pallas_src>
import math

import jax
import jax.numpy as jnp
from jax.experimental import pallas as pl
from jax.experimental.pallas import tpu as pltpu


def _round_up(n, m):
    return ((n + m - 1) // m) * m


def _padded_vmem_bytes(shape, itemsize=4):
    """Approximate VMEM footprint of one buffer after (8, 128) layout padding."""
    if len(shape) == 1:
        return _round_up(shape[0], 128) * itemsize
    lead = 1
    for d in shape[:-2]:
        lead *= d
    r = _round_up(shape[-2], 8)
    c = _round_up(shape[-1], 128)
    return lead * r * c * itemsize


def mlp_kernel(x_ref, w1_ref, b1_ref, w2_ref, b2_ref, w3_ref, b3_ref, o_ref):
    """One batch tile of the 3-layer MLP, fully VMEM resident (all f32).

    x : (TB, S)      w1: (S, H1)   b1: (1, H1)
                     w2: (H1, H2)  b2: (1, H2)
                     w3: (H2, O)   b3: (1, O)
    o : (TB, O)
    """
    x = x_ref[...]
    h1 = jnp.maximum(
        jnp.dot(x, w1_ref[...], preferred_element_type=jnp.float32) + b1_ref[...], 0.0
    )
    h2 = jnp.maximum(
        jnp.dot(h1, w2_ref[...], preferred_element_type=jnp.float32) + b2_ref[...], 0.0
    )
    o_ref[...] = (
        jnp.dot(h2, w3_ref[...], preferred_element_type=jnp.float32) + b3_ref[...]
    ).astype(o_ref.dtype)


def _choose_batch_tile(B, batch_tile):
    if B <= 16:
        # Single tile; block shape equal to the full array dims is always legal.
        return B
    # Aim for a grid of >= 2 steps (keeps both v7x TensorCores busy via the
    # "parallel" dimension), tiles a multiple of 8 rows, capped at batch_tile.
    return max(8, min(batch_tile, _round_up(pl.cdiv(B, 2), 8)))


def network_forward(x, params, *, batch_tile=1024):
    """Run the 3-layer MLP as one pipelined Pallas kernel over a batch grid.

    `params` must already be in kernel layout: weights (in, out), biases (1, out),
    all float32 (see init_params) -- no per-call re-packing is done here.
    """
    w1, b1, w2, b2, w3, b3 = params
    B, S = x.shape
    H1, H2, O = w1.shape[1], w2.shape[1], w3.shape[1]

    TB = _choose_batch_tile(B, batch_tile)
    grid = (pl.cdiv(B, TB),)  # partial final tile (if any) is handled by Pallas

    # Cost hint for XLA scheduling around the custom call (true, unpadded sizes).
    flops = 2 * B * (S * H1 + H1 * H2 + H2 * O)
    bytes_accessed = 4 * (
        B * S + S * H1 + H1 * H2 + H2 * O + H1 + H2 + O + B * O
    )

    # VMEM budget: double-buffered x/out tiles + (resident) weights/biases,
    # measured in layout-padded bytes, with 2x headroom; capped at 16 MiB.
    vmem_need = (
        2 * _padded_vmem_bytes((TB, S))
        + 2 * _padded_vmem_bytes((TB, O))
        + 2 * (
            _padded_vmem_bytes((S, H1)) + _padded_vmem_bytes((H1, H2))
            + _padded_vmem_bytes((H2, O))
            + _padded_vmem_bytes((1, H1)) + _padded_vmem_bytes((1, H2))
            + _padded_vmem_bytes((1, O))
        )
    )
    vmem_limit = int(min(16 * 1024 * 1024, max(4 * 1024 * 1024, 2 * vmem_need)))

    out = pl.pallas_call(
        mlp_kernel,
        out_shape=jax.ShapeDtypeStruct((B, O), jnp.float32),
        grid=grid,
        in_specs=[
            pl.BlockSpec((TB, S), lambda i: (i, 0)),   # x: tiled over batch only
            pl.BlockSpec((S, H1), lambda i: (0, 0)),   # weights/biases: grid-invariant
            pl.BlockSpec((1, H1), lambda i: (0, 0)),
            pl.BlockSpec((H1, H2), lambda i: (0, 0)),
            pl.BlockSpec((1, H2), lambda i: (0, 0)),
            pl.BlockSpec((H2, O), lambda i: (0, 0)),
            pl.BlockSpec((1, O), lambda i: (0, 0)),
        ],
        out_specs=pl.BlockSpec((TB, O), lambda i: (i, 0)),
        compiler_params=pltpu.CompilerParams(
            dimension_semantics=("parallel",),
            vmem_limit_bytes=vmem_limit,
        ),
        cost_estimate=pl.CostEstimate(
            flops=flops, transcendentals=0, bytes_accessed=bytes_accessed
        ),
    )(x, w1, b1, w2, b2, w3, b3)

    return out


def hidden_init_limit(fan_in):
    """Matches the PyTorch hidden_init helper: lim = 1/sqrt(fan_in)."""
    return 1.0 / math.sqrt(fan_in)


def init_params(key, state_size, fc1_units, fc2_units, out_size):
    """Deterministic parameter init mirroring Network.reset_parameters().

    Parameters are produced directly in kernel layout (weights (in, out),
    biases (1, out), f32) so no per-forward-call preparation is needed.
    """
    k = jax.random.split(key, 6)
    lim1 = hidden_init_limit(state_size)
    lim2 = hidden_init_limit(fc1_units)
    lim3 = 0.003
    # Weights stored (in, out); PyTorch nn.Linear stores (out, in) — transposed here.
    w1 = jax.random.uniform(k[0], (state_size, fc1_units), jnp.float32, -lim1, lim1)
    b1 = jax.random.uniform(k[1], (1, fc1_units), jnp.float32, -lim1, lim1)
    w2 = jax.random.uniform(k[2], (fc1_units, fc2_units), jnp.float32, -lim2, lim2)
    b2 = jax.random.uniform(k[3], (1, fc2_units), jnp.float32, -lim2, lim2)
    w3 = jax.random.uniform(k[4], (fc2_units, out_size), jnp.float32, -lim3, lim3)
    b3 = jax.random.uniform(k[5], (1, out_size), jnp.float32, -lim3, lim3)
    return (w1, b1, w2, b2, w3, b3)


def _reference_forward(x, params):
    """Plain-JAX reference (same math as the PyTorch module's MLP forward)."""
    w1, b1, w2, b2, w3, b3 = params
    h1 = jnp.maximum(x @ w1 + b1, 0.0)
    h2 = jnp.maximum(h1 @ w2 + b2, 0.0)
    return h2 @ w3 + b3


if __name__ == "__main__":
    # Small shapes consistent with the module: state_size=8, fc1=32, fc2=32, out=4.
    batch, state_size, fc1_units, fc2_units, out_size = 2, 8, 32, 32, 4

    key = jax.random.PRNGKey(0)
    key_x, key_p, key_xl = jax.random.split(key, 3)
    params = init_params(key_p, state_size, fc1_units, fc2_units, out_size)

    # 1) Tiny batch (single-tile path).
    x = jax.random.normal(key_x, (batch, state_size), dtype=jnp.float32)
    out = network_forward(x, params)
    jax.block_until_ready(out)
    ref = _reference_forward(x, params)
    assert out.shape == (batch, out_size)
    assert jnp.allclose(out, ref, atol=2e-3, rtol=2e-3), "mismatch (small batch)"

    # 2) Larger batch exercising the tiled, 2-step "parallel" grid path.
    big_batch = 512
    x_big = jax.random.normal(key_xl, (big_batch, state_size), dtype=jnp.float32)
    out_big = network_forward(x_big, params)
    jax.block_until_ready(out_big)
    ref_big = _reference_forward(x_big, params)
    assert out_big.shape == (big_batch, out_size)
    assert jnp.allclose(out_big, ref_big, atol=2e-3, rtol=2e-3), "mismatch (big batch)"

    print("KERNEL_OK")
</pallas_src>

<mosaic_0001>
module attributes {stable_mosaic.version = 11 : i64} {
  func.func @mlp_kernel(%arg0: i32, %arg1: memref<2x8xf32, #tpu.memory_space<vmem>>, %arg2: memref<8x32xf32, #tpu.memory_space<vmem>>, %arg3: memref<1x32xf32, #tpu.memory_space<vmem>>, %arg4: memref<32x32xf32, #tpu.memory_space<vmem>>, %arg5: memref<1x32xf32, #tpu.memory_space<vmem>>, %arg6: memref<32x4xf32, #tpu.memory_space<vmem>>, %arg7: memref<1x4xf32, #tpu.memory_space<vmem>>, %arg8: memref<2x4xf32, #tpu.memory_space<vmem>>) attributes {dimension_semantics = [#tpu.dimension_semantics<parallel>], iteration_bounds = array<i64: 1>, scalar_prefetch = 0 : i64, scratch_operands = 0 : i64, tpu.core_type = #tpu.core_type<tc>, window_params = [{transform_indices = @transform_0, window_bounds = array<i64: 2, 8>}, {pipeline_mode = #tpu.pipeline_mode<synchronous>, transform_indices = @transform_1, window_bounds = array<i64: 8, 32>}, {pipeline_mode = #tpu.pipeline_mode<synchronous>, transform_indices = @transform_2, window_bounds = array<i64: 1, 32>}, {pipeline_mode = #tpu.pipeline_mode<synchronous>, transform_indices = @transform_3, window_bounds = array<i64: 32, 32>}, {pipeline_mode = #tpu.pipeline_mode<synchronous>, transform_indices = @transform_4, window_bounds = array<i64: 1, 32>}, {pipeline_mode = #tpu.pipeline_mode<synchronous>, transform_indices = @transform_5, window_bounds = array<i64: 32, 4>}, {pipeline_mode = #tpu.pipeline_mode<synchronous>, transform_indices = @transform_6, window_bounds = array<i64: 1, 4>}, {transform_indices = @transform_7, window_bounds = array<i64: 2, 4>}]} {
    %c0 = arith.constant 0 : index
    %c0_0 = arith.constant 0 : index
    %0 = vector.load %arg1[%c0, %c0_0] : memref<2x8xf32, #tpu.memory_space<vmem>>, vector<2x8xf32>
    %c0_1 = arith.constant 0 : index
    %c0_2 = arith.constant 0 : index
    %1 = vector.load %arg2[%c0_1, %c0_2] : memref<8x32xf32, #tpu.memory_space<vmem>>, vector<8x32xf32>
    %cst = arith.constant dense<0.000000e+00> : vector<2x32xf32>
    %2 = tpu.matmul %0, %1, %cst {dimension_numbers = #tpu.dot_dimension_numbers<[1], [0], [0], [1], [0, 0, 1, 1], [], []>} : vector<2x8xf32>, vector<8x32xf32>, vector<2x32xf32> -> vector<2x32xf32>
    %c0_3 = arith.constant 0 : index
    %c0_4 = arith.constant 0 : index
    %3 = vector.load %arg3[%c0_3, %c0_4] : memref<1x32xf32, #tpu.memory_space<vmem>>, vector<1x32xf32>
    %4 = vector.broadcast %3 : vector<1x32xf32> to vector<2x32xf32>
    %5 = arith.addf %2, %4 : vector<2x32xf32>
    %cst_5 = arith.constant 0.000000e+00 : f32
    %6 = vector.broadcast %cst_5 : f32 to vector<2x32xf32>
    %7 = arith.maximumf %5, %6 : vector<2x32xf32>
    %c0_6 = arith.constant 0 : index
    %c0_7 = arith.constant 0 : index
    %8 = vector.load %arg4[%c0_6, %c0_7] : memref<32x32xf32, #tpu.memory_space<vmem>>, vector<32x32xf32>
    %cst_8 = arith.constant dense<0.000000e+00> : vector<2x32xf32>
    %9 = tpu.matmul %7, %8, %cst_8 {dimension_numbers = #tpu.dot_dimension_numbers<[1], [0], [0], [1], [0, 0, 1, 1], [], []>} : vector<2x32xf32>, vector<32x32xf32>, vector<2x32xf32> -> vector<2x32xf32>
    %c0_9 = arith.constant 0 : index
    %c0_10 = arith.constant 0 : index
    %10 = vector.load %arg5[%c0_9, %c0_10] : memref<1x32xf32, #tpu.memory_space<vmem>>, vector<1x32xf32>
    %11 = vector.broadcast %10 : vector<1x32xf32> to vector<2x32xf32>
    %12 = arith.addf %9, %11 : vector<2x32xf32>
    %cst_11 = arith.constant 0.000000e+00 : f32
    %13 = vector.broadcast %cst_11 : f32 to vector<2x32xf32>
    %14 = arith.maximumf %12, %13 : vector<2x32xf32>
    %c0_12 = arith.constant 0 : index
    %c0_13 = arith.constant 0 : index
    %15 = vector.load %arg6[%c0_12, %c0_13] : memref<32x4xf32, #tpu.memory_space<vmem>>, vector<32x4xf32>
    %cst_14 = arith.constant dense<0.000000e+00> : vector<2x4xf32>
    %16 = tpu.matmul %14, %15, %cst_14 {dimension_numbers = #tpu.dot_dimension_numbers<[1], [0], [0], [1], [0, 0, 1, 1], [], []>} : vector<2x32xf32>, vector<32x4xf32>, vector<2x4xf32> -> vector<2x4xf32>
    %c0_15 = arith.constant 0 : index
    %c0_16 = arith.constant 0 : index
    %17 = vector.load %arg7[%c0_15, %c0_16] : memref<1x4xf32, #tpu.memory_space<vmem>>, vector<1x4xf32>
    %18 = vector.broadcast %17 : vector<1x4xf32> to vector<2x4xf32>
    %19 = arith.addf %16, %18 : vector<2x4xf32>
    %c0_17 = arith.constant 0 : index
    %c0_18 = arith.constant 0 : index
    %20 = vector.load %arg8[%c0_17, %c0_18] : memref<2x4xf32, #tpu.memory_space<vmem>>, vector<2x4xf32>
    tpu.vector_store %arg8[%c0_17, %c0_18], %19 {strides = array<i32>} : memref<2x4xf32, #tpu.memory_space<vmem>>, vector<2x4xf32>,
    return
  }
  func.func @transform_0(%arg0: i32) -> (i32, i32) {
    %c0_i32 = arith.constant 0 : i32
    %c0_i32_0 = arith.constant 0 : i32
    return %arg0, %c0_i32 : i32, i32
  }
  func.func @transform_1(%arg0: i32) -> (i32, i32) {
    %c0_i32 = arith.constant 0 : i32
    %c0_i32_0 = arith.constant 0 : i32
    %c0_i32_1 = arith.constant 0 : i32
    return %c0_i32, %c0_i32_0 : i32, i32
  }
  func.func @transform_2(%arg0: i32) -> (i32, i32) {
    %c0_i32 = arith.constant 0 : i32
    %c0_i32_0 = arith.constant 0 : i32
    %c0_i32_1 = arith.constant 0 : i32
    return %c0_i32, %c0_i32_0 : i32, i32
  }
  func.func @transform_3(%arg0: i32) -> (i32, i32) {
    %c0_i32 = arith.constant 0 : i32
    %c0_i32_0 = arith.constant 0 : i32
    %c0_i32_1 = arith.constant 0 : i32
    return %c0_i32, %c0_i32_0 : i32, i32
  }
  func.func @transform_4(%arg0: i32) -> (i32, i32) {
    %c0_i32 = arith.constant 0 : i32
    %c0_i32_0 = arith.constant 0 : i32
    %c0_i32_1 = arith.constant 0 : i32
    return %c0_i32, %c0_i32_0 : i32, i32
  }
  func.func @transform_5(%arg0: i32) -> (i32, i32) {
    %c0_i32 = arith.constant 0 : i32
    %c0_i32_0 = arith.constant 0 : i32
    %c0_i32_1 = arith.constant 0 : i32
    return %c0_i32, %c0_i32_0 : i32, i32
  }
  func.func @transform_6(%arg0: i32) -> (i32, i32) {
    %c0_i32 = arith.constant 0 : i32
    %c0_i32_0 = arith.constant 0 : i32
    %c0_i32_1 = arith.constant 0 : i32
    return %c0_i32, %c0_i32_0 : i32, i32
  }
  func.func @transform_7(%arg0: i32) -> (i32, i32) {
    %c0_i32 = arith.constant 0 : i32
    %c0_i32_0 = arith.constant 0 : i32
    return %arg0, %c0_i32 : i32, i32
  }
}

</mosaic_0001>

<bundles_post_ra>
// kernel: tpu_custom_call.1
= control target key start
LH: loop header
LB: loop body
LE: loop exit
PB: predicated region body
PF: predicated region fallthrough
CT: control target
= control target key end

     0   :  { %vm36_vm0 = vcmask 64512   ;;  %v382_v2 = vmov 0.0   ;;  %vm383_vm1 = vmmov 0   ;;  %v384_v5 = vmov 0.0|0.0   ;;  %s477_s0 = inlined_call_operand.vmem [shape: f32[2,8], index: 0, kind: input, shape index: {}]   ;;  %s478_s1 = inlined_call_operand.vmem [shape: f32[8,32], index: 1, kind: input, shape index: {}]   ;;  %s479_s2 = inlined_call_operand.vmem [shape: f32[1,32], index: 2, kind: input, shape index: {}]   ;;  %s480_s3 = inlined_call_operand.vmem [shape: f32[32,32], index: 3, kind: input, shape index: {}]   ;;  %s481_s4 = inlined_call_operand.vmem [shape: f32[1,32], index: 4, kind: input, shape index: {}]   ;;  %s482_s5 = inlined_call_operand.vmem [shape: f32[32,4], index: 5, kind: input, shape index: {}]   ;;  %s483_s6 = inlined_call_operand.vmem [shape: f32[1,4], index: 6, kind: input, shape index: {}]   ;;  %s484_s7 = inlined_call_operand.hbm [shape: f32[2,4], index: 7, kind: output, shape index: {}]  }
   0x1   :  { %v28_v0 = vld [vmem:[%s478_s1] sm:$0xff]  ;;  %315 = vmatprep.subr.mxu0 %v382_v2  ;;  %317 = vmatprep.mubr.msk.f32.mxu0 %vm383_vm1, %v382_v2  ;;  %v112_v4 = vld [vmem:[%s480_s3 + $0x8] sm:$0xff] }
   0x2   :  { %v27_v1 = vld [vmem:[%s477_s0] sm:$0x3]  ;;  %316 = vmatpush3.msra.mxu0 %v28_v0  ;;  %342 = vmatprep.subr.bf16.mxu1 %v384_v5 }
   0x3   :  { %v111_v3 = vld [vmem:[%s480_s3] sm:$0xff] }
   0x4   :  { %v343_v6 = vpack.c.bf16 %v112_v4, %v111_v3 }
   0x5   :  { %12 = vsyncpa [#allocation3], 0  ;;  %318 = vmatmul.mubr.msk.f32.vlgmr.msra.gmra.mrb[0].mxu0 %vm36_vm0, %v27_v1  ;;  %328 = vmatprep.mubr.msk.f32.mxu1 %vm383_vm1, %v382_v2  ;;  %v113_v7 = vld [vmem:[%s480_s3 + $0x10] sm:$0xff]  ;;  %v114_v8 = vld [vmem:[%s480_s3 + $0x18] sm:$0xff]  ;;  %vm122_vm2 = vcmask 261120   ;;  %s385_s23 = smov [#allocation2]  }
   0x6   :  { %344 = vmatpush3.bf16.msra.mxu1 %v343_v6  ;;  %348 = vmatprep.subr.bf16.mxu0 %v384_v5  ;;  %v346_v9 = vpack.c.bf16 %v114_v8, %v113_v7  ;;  %v197_v10 = vld [vmem:[%s482_s5] sm:$0xff]  ;;  %v198_v11 = vld [vmem:[%s482_s5 + $0x8] sm:$0xff]  ;;  %v199_v18 = vld [vmem:[%s482_s5 + $0x10] sm:$0xff]  ;;  %s289_s24 = sshll.u32 %s385_s23, 4  ;;  %vm281_vm3 = vcmask 25600   ;;  %s290_s24 = int_to_ptr.vmem [resolvable:$true] %s289_s24 }
   0x7   :  { %345 = vmatprep.subr.bf16.mxu1 %v384_v5  ;;  %339 = vmatprep.mubr.msk.f32.mxu0 %vm383_vm1, %v382_v2  ;;  %v349_v12 = vpack.c.bf16 %v198_v11, %v197_v10  ;;  %v297_v13 = vld [vmem:[%s479_s2] ss:$0 sm:$0xff]  ;;  %v200_v19 = vld [vmem:[%s482_s5 + $0x18] sm:$0xff]  ;;  %s358_s5 = scalar_lea.vmem %s290_s24, 32  ;;  %p363_p1 = scmp.lt.s32.totalorder %s290_s24, %s290_s24 }
   0x8   :  { %v352_v20 = vpack.c.bf16 %v200_v19, %v199_v18  ;;  %v299_v21 = vld [vmem:[%s481_s4] ss:$0 sm:$0xff]  ;;  %p359_p0 = scmp.ne.s32.totalorder %s290_s24, %s358_s5  ;;  %p364_p2 = scmp.lt.s32.totalorder %s358_s5, %s358_s5 }
   0x9   :  { %350 = vmatpush3.bf16.msra.mxu0 %v349_v12  ;;  %v301_v26 = vld [vmem:[%s483_s6] ss:$0 sm:$0xff] }
   0xa   :  { %347 = vmatpush3.bf16.msra.mxu1 %v346_v9  ;;  %351 = vmatprep.subr.bf16.mxu0 %v384_v5  ;;  %p365_p3 = por %p364_p2, %p363_p1 }
   0xc   :  { %p366_p4 = pnand %p365_p3, %p359_p0 }
   0xd   :  { %353 = vmatpush3.bf16.msra.mxu0 %v352_v20 }
  0xd8   :  { %v106_v14 = vpop.f32.mrb[0].mxu0 }
  0xd9   :  { %v107_v15 = vadd.f32 %v297_v13, %v106_v14  ;;  %v319_v16 = vpop.f32.mrb[1].mxu0 }
  0xdb   :  { %v110_v17 = vmax.f32 %v107_v15, 0.0 }
  0xdd   :  { %329 = vmatmul.mubr.msk.f32.vlgmr.msra.gmra.mrb[0].mxu1 %vm122_vm2, %v110_v17 }
 0x1b0   :  { %v192_v22 = vpop.f32.mrb[0].mxu1 }
 0x1b1   :  { %v193_v23 = vadd.f32 %v299_v21, %v192_v22  ;;  %v330_v24 = vpop.f32.mrb[1].mxu1 }
 0x1b3   :  { %v196_v25 = vmax.f32 %v193_v23, 0.0 }
 0x1b5   :  { %340 = vmatmul.mubr.msk.f32.vlgmr.msra.gmra.mrb[2].mxu0 %vm122_vm2, %v196_v25 }
 0x288   :  { %v277_v27 = vpop.f32.mrb[2].mxu0 }
 0x289   :  { %v278_v28 = vadd.f32 %v301_v26, %v277_v27  ;;  %v341_v29 = vpop.f32.mrb[3].mxu0 }
 0x28b   :  { %282 = vst.msk [vmem:[#allocation2] sm:$0x3] %vm281_vm3, %v278_v28 }
 0x28c   :  { %369 = shalt.err (!%p366_p4)
}
 0x28d   :  { %s370_s26 = scalar_lea.hbm %s484_s7, 32 }
 0x28e   :  { %p371_p5 = scmp.ne.s32.totalorder %s484_s7, %s370_s26  ;;  %p374_p6 = scmp.lt.u32.totalorder %s370_s26, %s484_s7 }
 0x290   :  { %p376_p7 = pnand %p374_p6, %p371_p5 }
 0x292   :  { %379 = shalt.err (!%p376_p7)
}
 0x293   :  { %292 = dma.vmem_to_hbm [thread:$0]  %s290_s24, 32, %s484_s7, [#allocation3]  }
 0x294   :  { %380 = dma.done.wait [#allocation3], 32  }
 0x295   :  { %381 = vsyncadd [#allocation3], 4294967264 }
 0x296   :  { %296 = vsyncpa [#allocation3], 1 }

</bundles_post_ra>
